<compile_context>
chip_gen: v5e
topology: v5e:2x2
jax: 0.10.0
libtpu: 0.0.40
codegen_flags: <defaults>
</compile_context>

<pallas_src>
import functools

import jax
import jax.numpy as jnp
from jax.experimental import pallas as pl
from jax.experimental.pallas import tpu as pltpu

_LANE = 128
_SUBLANE = 8
_MAX_BLOCK_ROWS = 2048   # 2048 x 128 x 4B = 1 MiB per f32 input block
_NUM_SPLITS = 2          # leading "parallel" axis -> dual-TC split on v7x


def _iou_partial_kernel(x_ref, t_ref, inter_ref, total_ref, *,
                        block_rows, inner_blocks, total_blocks, rows,
                        need_mask):
    c = pl.program_id(0)   # split / core index ("parallel")
    i = pl.program_id(1)   # row-block index within the split ("arbitrary")

    @pl.when(i == 0)
    def _():
        inter_ref[...] = jnp.zeros_like(inter_ref)
        total_ref[...] = jnp.zeros_like(total_ref)

    x = x_ref[...].astype(jnp.float32)
    t = t_ref[...].astype(jnp.float32)
    # Sigmoid kept on the EUP slot: exp + approximate reciprocal.
    p = pl.reciprocal(1.0 + jnp.exp(-x), approx=True)

    prod = p * t           # -> intersection partial
    ssum = p + t           # -> total partial

    def _fold(v):
        # (block_rows, 128) -> (8, 128): pure vreg-wise VALU adds, so the
        # persistent accumulator is a single vreg per quantity.
        return v.reshape(block_rows // _SUBLANE, _SUBLANE, _LANE).sum(axis=0)

    if need_mask:
        # Only the last logical block (and clamped overflow blocks of an
        # uneven block->split distribution) can contain rows past the end of
        # the data, so the masking cost is gated out of the steady state.
        # NOTE: int32 row math -- assumes fewer than 2**31 elements.
        logical_block = c * inner_blocks + i

        @pl.when(logical_block < total_blocks - 1)
        def _():
            inter_ref[...] += _fold(prod)
            total_ref[...] += _fold(ssum)

        @pl.when(logical_block >= total_blocks - 1)
        def _():
            start_row = logical_block * block_rows
            row = jax.lax.broadcasted_iota(jnp.int32, (block_rows, _LANE), 0)
            valid = (start_row + row) < rows
            inter_ref[...] += _fold(jnp.where(valid, prod, 0.0))
            total_ref[...] += _fold(jnp.where(valid, ssum, 0.0))
    else:
        inter_ref[...] += _fold(prod)
        total_ref[...] += _fold(ssum)


def _partial_sums(x2, t2, rows, block_rows):
    """Returns (sum(sigmoid(x)*t), sum(sigmoid(x)+t)) over a (rows, 128) view."""
    total_blocks = pl.cdiv(rows, block_rows)
    num_splits = _NUM_SPLITS if total_blocks >= _NUM_SPLITS else 1
    inner_blocks = pl.cdiv(total_blocks, num_splits)
    need_mask = (rows % block_rows != 0) or (num_splits * inner_blocks != total_blocks)

    kernel = functools.partial(
        _iou_partial_kernel,
        block_rows=block_rows,
        inner_blocks=inner_blocks,
        total_blocks=total_blocks,
        rows=rows,
        need_mask=need_mask,
    )

    def in_map(c, i):
        # Clamp overflow blocks of an uneven split to the last valid block;
        # their contribution is zeroed by the in-kernel row mask.
        return (jnp.minimum(c * inner_blocks + i, total_blocks - 1), 0)

    out_map = lambda c, i: (c, 0, 0)

    inter_parts, total_parts = pl.pallas_call(
        kernel,
        out_shape=(
            jax.ShapeDtypeStruct((num_splits, _SUBLANE, _LANE), jnp.float32),
            jax.ShapeDtypeStruct((num_splits, _SUBLANE, _LANE), jnp.float32),
        ),
        grid_spec=pltpu.PrefetchScalarGridSpec(
            num_scalar_prefetch=0,
            grid=(num_splits, inner_blocks),
            in_specs=[
                pl.BlockSpec((block_rows, _LANE), in_map),
                pl.BlockSpec((block_rows, _LANE), in_map),
            ],
            out_specs=[
                pl.BlockSpec((None, _SUBLANE, _LANE), out_map),
                pl.BlockSpec((None, _SUBLANE, _LANE), out_map),
            ],
        ),
        compiler_params=pltpu.CompilerParams(
            dimension_semantics=("parallel", "arbitrary"),
        ),
    )(x2, t2)
    return jnp.sum(inter_parts), jnp.sum(total_parts)


def iou_loss(inputs, targets, smooth=1.0):
    """Pallas TPU implementation of IoULoss.forward."""
    x = inputs.reshape(-1)   # free row-major flatten; HBM dtype preserved
    t = targets.reshape(-1)
    n = x.shape[0]

    m = (n // _LANE) * _LANE      # lane-aligned prefix handled by the kernel
    rows = m // _LANE

    inter = jnp.float32(0.0)
    total = jnp.float32(0.0)
    tail_start = 0

    if rows >= _SUBLANE:
        block_rows = min(_MAX_BLOCK_ROWS, (rows // _SUBLANE) * _SUBLANE)
        if m == n:
            x2 = x.reshape(rows, _LANE)     # zero-copy reshape
            t2 = t.reshape(rows, _LANE)
        else:
            x2 = x[:m].reshape(rows, _LANE)
            t2 = t[:m].reshape(rows, _LANE)
        ki, kt = _partial_sums(x2, t2, rows, block_rows)
        inter = inter + ki
        total = total + kt
        tail_start = m

    if tail_start < n:
        # < 128-element (or tiny-input) remainder: fold in with plain XLA ops
        # instead of padding/copying the whole flattened tensor.
        x_tail = x[tail_start:].astype(jnp.float32)
        t_tail = t[tail_start:].astype(jnp.float32)
        p_tail = jax.nn.sigmoid(x_tail)
        inter = inter + jnp.sum(p_tail * t_tail)
        total = total + jnp.sum(p_tail + t_tail)

    union = total - inter
    iou = (inter + smooth) / (union + smooth)
    return 1.0 - iou


def _reference(inputs, targets, smooth=1.0):
    p = jax.nn.sigmoid(inputs.astype(jnp.float32)).reshape(-1)
    t = targets.astype(jnp.float32).reshape(-1)
    inter = jnp.sum(p * t)
    total = jnp.sum(p + t)
    union = total - inter
    return 1.0 - (inter + smooth) / (union + smooth)


if __name__ == "__main__":
    key = jax.random.PRNGKey(0)
    k1, k2, k3, k4, k5, k6 = jax.random.split(key, 6)

    # Tolerances are relaxed slightly because of the approximate EUP reciprocal
    # in the in-kernel sigmoid.
    TOL = dict(atol=2e-3, rtol=2e-3)

    # 1) Small aligned NCHW case (single block, no masking path).
    x1 = jax.random.normal(k1, (2, 4, 16, 16), dtype=jnp.float32)
    t1 = (jax.random.uniform(k2, (2, 4, 16, 16)) > 0.5).astype(jnp.float32)
    l1 = jax.block_until_ready(iou_loss(x1, t1, smooth=1.0))
    r1 = jax.block_until_ready(_reference(x1, t1, smooth=1.0))
    assert jnp.allclose(l1, r1, **TOL), (l1, r1)

    # 2) Odd, lane-unaligned size: exercises the in-kernel row masking plus the
    #    <128-element wrapper-side tail correction (no full-array pad copy).
    x2 = jax.random.normal(k3, (3, 5, 7, 11), dtype=jnp.float32)
    t2 = (jax.random.uniform(k4, (3, 5, 7, 11)) > 0.5).astype(jnp.float32)
    l2 = jax.block_until_ready(iou_loss(x2, t2, smooth=1.0))
    r2 = jax.block_until_ready(_reference(x2, t2, smooth=1.0))
    assert jnp.allclose(l2, r2, **TOL), (l2, r2)

    # 3) Larger case: multiple row blocks, dual-split grid, uneven block->split
    #    distribution (exercises the clamped/overflow-masked path).
    x3 = jax.random.normal(k5, (3, 4, 256, 256), dtype=jnp.float32)
    t3 = (jax.random.uniform(k6, (3, 4, 256, 256)) > 0.5).astype(jnp.float32)
    l3 = jax.block_until_ready(iou_loss(x3, t3, smooth=1.0))
    r3 = jax.block_until_ready(_reference(x3, t3, smooth=1.0))
    assert jnp.allclose(l3, r3, **TOL), (l3, r3)

    print("KERNEL_OK")
</pallas_src>

<mosaic_0001>
module attributes {stable_mosaic.version = 11 : i64} {
  func.func @_iou_partial_kernel(%arg0: i32, %arg1: i32, %arg2: memref<16x128xf32, #tpu.memory_space<vmem>>, %arg3: memref<16x128xf32, #tpu.memory_space<vmem>>, %arg4: memref<1x8x128xf32, #tpu.memory_space<vmem>>, %arg5: memref<1x8x128xf32, #tpu.memory_space<vmem>>) attributes {dimension_semantics = [#tpu.dimension_semantics<parallel>, #tpu.dimension_semantics<arbitrary>], iteration_bounds = array<i64: 1, 1>, scalar_prefetch = 0 : i64, scratch_operands = 0 : i64, tpu.core_type = #tpu.core_type<tc>, window_params = [{transform_indices = @transform_0, window_bounds = array<i64: 16, 128>}, {transform_indices = @transform_1, window_bounds = array<i64: 16, 128>}, {transform_indices = @transform_2, window_bounds = array<i64: 1, 8, 128>}, {transform_indices = @transform_3, window_bounds = array<i64: 1, 8, 128>}]} {
    %c0_i32 = arith.constant 0 : i32
    %0 = arith.cmpi eq, %arg1, %c0_i32 : i32
    %1 = arith.extui %0 : i1 to i32
    %c0_i32_0 = arith.constant 0 : i32
    %2 = arith.cmpi ne, %1, %c0_i32_0 : i32
    scf.if %2 {
      %cst_19 = arith.constant 0.000000e+00 : f32
      %29 = vector.broadcast %cst_19 : f32 to vector<8x128xf32>
      %c0_20 = arith.constant 0 : index
      %c0_21 = arith.constant 0 : index
      %c0_22 = arith.constant 0 : index
      %30 = vector.load %arg4[%c0_20, %c0_21, %c0_22] : memref<1x8x128xf32, #tpu.memory_space<vmem>>, vector<1x8x128xf32>
      %31 = vector.shape_cast %30 : vector<1x8x128xf32> to vector<8x128xf32>
      %32 = vector.shape_cast %29 : vector<8x128xf32> to vector<1x8x128xf32>
      tpu.vector_store %arg4[%c0_20, %c0_21, %c0_22], %32 {strides = array<i32>} : memref<1x8x128xf32, #tpu.memory_space<vmem>>, vector<1x8x128xf32>,
      %cst_23 = arith.constant 0.000000e+00 : f32
      %33 = vector.broadcast %cst_23 : f32 to vector<8x128xf32>
      %c0_24 = arith.constant 0 : index
      %c0_25 = arith.constant 0 : index
      %c0_26 = arith.constant 0 : index
      %34 = vector.load %arg5[%c0_24, %c0_25, %c0_26] : memref<1x8x128xf32, #tpu.memory_space<vmem>>, vector<1x8x128xf32>
      %35 = vector.shape_cast %34 : vector<1x8x128xf32> to vector<8x128xf32>
      %36 = vector.shape_cast %33 : vector<8x128xf32> to vector<1x8x128xf32>
      tpu.vector_store %arg5[%c0_24, %c0_25, %c0_26], %36 {strides = array<i32>} : memref<1x8x128xf32, #tpu.memory_space<vmem>>, vector<1x8x128xf32>,
    } else {
    }
    %c0 = arith.constant 0 : index
    %c0_1 = arith.constant 0 : index
    %3 = vector.load %arg2[%c0, %c0_1] : memref<16x128xf32, #tpu.memory_space<vmem>>, vector<16x128xf32>
    %c0_2 = arith.constant 0 : index
    %c0_3 = arith.constant 0 : index
    %4 = vector.load %arg3[%c0_2, %c0_3] : memref<16x128xf32, #tpu.memory_space<vmem>>, vector<16x128xf32>
    %cst = arith.constant 0.000000e+00 : f32
    %5 = vector.broadcast %cst : f32 to vector<16x128xf32>
    %6 = arith.subf %5, %3 : vector<16x128xf32>
    %7 = math.exp %6 : vector<16x128xf32>
    %cst_4 = arith.constant 1.000000e+00 : f32
    %8 = vector.broadcast %cst_4 : f32 to vector<16x128xf32>
    %9 = arith.addf %8, %7 : vector<16x128xf32>
    %10 = tpu.reciprocal %9 {approx = true} : vector<16x128xf32> -> vector<16x128xf32>
    %11 = arith.mulf %10, %4 : vector<16x128xf32>
    %12 = arith.addf %10, %4 : vector<16x128xf32>
    %c0_5 = arith.constant 0 : index
    %c0_6 = arith.constant 0 : index
    %c0_7 = arith.constant 0 : index
    %13 = vector.load %arg4[%c0_5, %c0_6, %c0_7] : memref<1x8x128xf32, #tpu.memory_space<vmem>>, vector<1x8x128xf32>
    %14 = vector.shape_cast %13 : vector<1x8x128xf32> to vector<8x128xf32>
    %15 = vector.shape_cast %11 : vector<16x128xf32> to vector<2x8x128xf32>
    %cst_8 = arith.constant dense<0.000000e+00> : vector<8x128xf32>
    %16 = vector.multi_reduction <add>, %15, %cst_8 [0] : vector<2x8x128xf32> to vector<8x128xf32>
    %17 = arith.addf %14, %16 : vector<8x128xf32>
    %c0_9 = arith.constant 0 : index
    %c0_10 = arith.constant 0 : index
    %c0_11 = arith.constant 0 : index
    %18 = vector.load %arg4[%c0_9, %c0_10, %c0_11] : memref<1x8x128xf32, #tpu.memory_space<vmem>>, vector<1x8x128xf32>
    %19 = vector.shape_cast %18 : vector<1x8x128xf32> to vector<8x128xf32>
    %20 = vector.shape_cast %17 : vector<8x128xf32> to vector<1x8x128xf32>
    tpu.vector_store %arg4[%c0_9, %c0_10, %c0_11], %20 {strides = array<i32>} : memref<1x8x128xf32, #tpu.memory_space<vmem>>, vector<1x8x128xf32>,
    %c0_12 = arith.constant 0 : index
    %c0_13 = arith.constant 0 : index
    %c0_14 = arith.constant 0 : index
    %21 = vector.load %arg5[%c0_12, %c0_13, %c0_14] : memref<1x8x128xf32, #tpu.memory_space<vmem>>, vector<1x8x128xf32>
    %22 = vector.shape_cast %21 : vector<1x8x128xf32> to vector<8x128xf32>
    %23 = vector.shape_cast %12 : vector<16x128xf32> to vector<2x8x128xf32>
    %cst_15 = arith.constant dense<0.000000e+00> : vector<8x128xf32>
    %24 = vector.multi_reduction <add>, %23, %cst_15 [0] : vector<2x8x128xf32> to vector<8x128xf32>
    %25 = arith.addf %22, %24 : vector<8x128xf32>
    %c0_16 = arith.constant 0 : index
    %c0_17 = arith.constant 0 : index
    %c0_18 = arith.constant 0 : index
    %26 = vector.load %arg5[%c0_16, %c0_17, %c0_18] : memref<1x8x128xf32, #tpu.memory_space<vmem>>, vector<1x8x128xf32>
    %27 = vector.shape_cast %26 : vector<1x8x128xf32> to vector<8x128xf32>
    %28 = vector.shape_cast %25 : vector<8x128xf32> to vector<1x8x128xf32>
    tpu.vector_store %arg5[%c0_16, %c0_17, %c0_18], %28 {strides = array<i32>} : memref<1x8x128xf32, #tpu.memory_space<vmem>>, vector<1x8x128xf32>,
    return
  }
  func.func @transform_0(%arg0: i32, %arg1: i32) -> (i32, i32) {
    %c1_i32 = arith.constant 1 : i32
    %0 = arith.muli %arg0, %c1_i32 : i32
    %1 = arith.addi %0, %arg1 : i32
    %c0_i32 = arith.constant 0 : i32
    %2 = arith.minsi %1, %c0_i32 : i32
    %c0_i32_0 = arith.constant 0 : i32
    %c0_i32_1 = arith.constant 0 : i32
    return %2, %c0_i32_0 : i32, i32
  }
  func.func @transform_1(%arg0: i32, %arg1: i32) -> (i32, i32) {
    %c1_i32 = arith.constant 1 : i32
    %0 = arith.muli %arg0, %c1_i32 : i32
    %1 = arith.addi %0, %arg1 : i32
    %c0_i32 = arith.constant 0 : i32
    %2 = arith.minsi %1, %c0_i32 : i32
    %c0_i32_0 = arith.constant 0 : i32
    %c0_i32_1 = arith.constant 0 : i32
    return %2, %c0_i32_0 : i32, i32
  }
  func.func @transform_2(%arg0: i32, %arg1: i32) -> (i32, i32, i32) {
    %c0_i32 = arith.constant 0 : i32
    %c0_i32_0 = arith.constant 0 : i32
    %c0_i32_1 = arith.constant 0 : i32
    return %arg0, %c0_i32, %c0_i32_0 : i32, i32, i32
  }
  func.func @transform_3(%arg0: i32, %arg1: i32) -> (i32, i32, i32) {
    %c0_i32 = arith.constant 0 : i32
    %c0_i32_0 = arith.constant 0 : i32
    %c0_i32_1 = arith.constant 0 : i32
    return %arg0, %c0_i32, %c0_i32_0 : i32, i32, i32
  }
}

</mosaic_0001>

<bundles_post_ra>
// kernel: tpu_custom_call.1
= control target key start
LH: loop header
LB: loop body
LE: loop exit
PB: predicated region body
PF: predicated region fallthrough
CT: control target
= control target key end

     0   :  { %9 = vsyncpa [#allocation3], 0  ;;  %s294_s0 = inlined_call_operand.hbm [shape: f32[16,128], index: 0, kind: input, shape index: {}]   ;;  %s295_s1 = inlined_call_operand.hbm [shape: f32[16,128], index: 1, kind: input, shape index: {}]   ;;  %s296_s2 = inlined_call_operand.hbm [shape: f32[1,8,128], index: 2, kind: output, shape index: {0}]   ;;  %s297_s3 = inlined_call_operand.hbm [shape: f32[1,8,128], index: 3, kind: output, shape index: {1}]  }
   0x1   :  { %10 = vsyncpa [#allocation6], 0 }
   0x2   :  { %11 = vsyncpa [#allocation4], 0 }
   0x3   :  { %12 = vsyncpa [#allocation9], 0  ;;  %s23_s14 = sshll.u32 %s294_s0, 4  ;;  %s256_s15 = smov [#allocation2]   ;;  %s24_s14 = int_to_ptr.hbm [resolvable:$true] %s23_s14 }
   0x4   :  { %s25_s16 = sshll.u32 %s256_s15, 4  ;;  %s42_s19 = sshll.u32 %s295_s1, 4  ;;  %s26_s16 = int_to_ptr.vmem [resolvable:$true] %s25_s16  ;;  %s43_s19 = int_to_ptr.hbm [resolvable:$true] %s42_s19 }
   0x5   :  { %s257_s20 = smov 128   ;;  %s258_s21 = smov 8  }
   0x6   :  { %31 = dma.hbm_to_vmem [thread:$0]  %s24_s14, 256, %s26_s16, [#allocation3], %s257_s20, %s257_s20, %s258_s21  }
   0x7   :  { %s259_s22 = smov [#allocation5]  }
   0x8   :  { %s44_s23 = sshll.u32 %s259_s22, 4  ;;  %s45_s23 = int_to_ptr.vmem [resolvable:$true] %s44_s23 }
   0x9   :  { %50 = dma.hbm_to_vmem [thread:$0]  %s43_s19, 256, %s45_s23, [#allocation6], %s257_s20, %s257_s20, %s258_s21  }
   0xa   :  { %248 = dma.done.wait [#allocation3], 256  }
   0xb   :  { %249 = vsyncadd [#allocation3], 4294967040 }
   0xc   :  { %250 = dma.done.wait [#allocation6], 256  }
   0xd   :  { %251 = vsyncadd [#allocation6], 4294967040  ;;  %v73_v0 = vld [vmem:[#allocation2] sm:$0xff]  ;;  %v74_v1 = vld [vmem:[#allocation2 + $0x8] sm:$0xff]  ;;  %s260_s0 = smov [#allocation7]   ;;  %s106_s26 = sshll.u32 %s296_s2, 4  ;;  %s107_s26 = int_to_ptr.hbm [resolvable:$true] %s106_s26 }
   0xe   :  { %v77_v2 = vsub.f32 0.0, %v73_v0  ;;  %v78_v3 = vsub.f32 0.0, %v74_v1  ;;  %v75_v10 = vld [vmem:[#allocation5] sm:$0xff]  ;;  %v76_v11 = vld [vmem:[#allocation5 + $0x8] sm:$0xff]  ;;  %s104_s1 = sshll.u32 %s260_s0, 4  ;;  %s261_s27 = smov [#allocation8]   ;;  %s105_s1 = int_to_ptr.vmem [resolvable:$true] %s104_s1 }
   0xf   :  { %s115_s28 = sshll.u32 %s261_s27, 4  ;;  %s117_s4 = sshll.u32 %s297_s3, 4  ;;  %s116_s28 = int_to_ptr.vmem [resolvable:$true] %s115_s28  ;;  %s118_s4 = int_to_ptr.hbm [resolvable:$true] %s117_s4 }
  0x10   :  { %v79_v4 = vmul.f32 1.442695, %v77_v2  ;;  %v81_v5 = vmul.f32 1.442695, %v78_v3 }
  0x12   :  { %144 = vpow2.f32 %v79_v4 }
  0x13   :  { %146 = vpow2.f32 %v81_v5 }
  0x18   :  { %v145_v6 = vpop.eup %144 }
  0x19   :  { %v147_v7 = vpop.eup %146  ;;  %v83_v8 = vadd.f32 1.0, %v145_v6 }
  0x1a   :  { %v84_v9 = vadd.f32 1.0, %v147_v7 }
  0x1b   :  { %148 = vrcp.f32 %v83_v8 }
  0x1c   :  { %150 = vrcp.f32 %v84_v9 }
  0x21   :  { %v149_v12 = vpop.eup %148 }
  0x22   :  { %v151_v13 = vpop.eup %150  ;;  %v87_v14 = vmul.f32 %v149_v12, %v75_v10  ;;  %v89_v15 = vadd.f32 %v149_v12, %v75_v10 }
  0x23   :  { %v88_v16 = vmul.f32 %v151_v13, %v76_v11  ;;  %v90_v17 = vadd.f32 %v151_v13, %v76_v11 }
  0x25   :  { %v92_v18 = vadd.f32 %v88_v16, %v87_v14  ;;  %v96_v19 = vadd.f32 %v90_v17, %v89_v15 }
  0x27   :  { %94 = vst [vmem:[#allocation7] sm:$0xff] %v92_v18 }
  0x28   :  { %98 = vst [vmem:[#allocation8] sm:$0xff] %v96_v19  ;;  %109 = dma.vmem_to_hbm [thread:$0]  %s105_s1, 128, %s107_s26, [#allocation4]  }
  0x29   :  { %120 = dma.vmem_to_hbm [thread:$0]  %s116_s28, 128, %s118_s4, [#allocation9]  }
  0x2a   :  { %252 = dma.done.wait [#allocation4], 128  }
  0x2b   :  { %253 = vsyncadd [#allocation4], 4294967168 }
  0x2c   :  { %254 = dma.done.wait [#allocation9], 128  }
  0x2d   :  { %255 = vsyncadd [#allocation9], 4294967168 }
  0x2e   :  { %129 = vsyncpa [#allocation3], 1 }
  0x2f   :  { %130 = vsyncpa [#allocation6], 1 }
  0x30   :  { %131 = vsyncpa [#allocation4], 1 }
  0x31   :  { %132 = vsyncpa [#allocation9], 1 }

</bundles_post_ra>
